<compile_context>
chip_gen: v5e
topology: v5e:2x2
jax: 0.10.0
libtpu: 0.0.40
codegen_flags: <defaults>
</compile_context>

<pallas_src>
import jax
import jax.numpy as jnp
from jax.experimental import pallas as pl
from jax.experimental.pallas import tpu as pltpu
from jax.scipy.special import gammaln, digamma, betainc


def _round_up(a, m):
    return ((a + m - 1) // m) * m


# ----------------------------------------------------------------------------
# Fused kernel: voter matmul + sign + posterior-weighted correct/wrong sums +
# predict() scores, all in one grid step per batch tile.
# ----------------------------------------------------------------------------
def _fused_mv_kernel(x_ref, w_ref, params_ref, y_ref, out_ref, stats_ref):
    # MXU matmul: bf16 operands, f32 accumulation.
    logits = jnp.dot(x_ref[...], w_ref[...],
                     preferred_element_type=jnp.float32)          # (TB, Vp)

    p = params_ref[...]                                           # (8, Vp) f32
    bv = p[0:1, :]                                                # (1, Vp)
    post = p[1:2, :]                                              # (1, Vp)  exp(post_), 0-padded
    mv_post = p[2:3, :]                                           # (1, Vp)  Dirichlet sample, 0-padded

    logits = logits + bv
    # sign(); >=0 -> +1 (torch.sign(0)==0 differs only at exact-zero logits).
    out = jnp.where(logits >= 0.0, 1.0, -1.0)                     # (TB, Vp) in {-1,+1}
    out_ref[...] = out

    y = y_ref[...]                                                # (TB, 1) in {-1,+1}

    post_sum = jnp.sum(post, axis=1, keepdims=True)               # (1, 1)
    mv_sum = jnp.sum(mv_post, axis=1, keepdims=True)              # (1, 1) == 1.0

    s_post = jnp.sum(out * post, axis=1, keepdims=True)           # (TB, 1)
    s_mv = jnp.sum(out * mv_post, axis=1, keepdims=True)          # (TB, 1)

    # agree = 0.5*(1 + y*out)  =>  corr = sum(agree*post) = 0.5*(P + y*(out@post))
    corr = 0.5 * (post_sum + y * s_post)                          # (TB, 1)
    wrong = post_sum - corr                                       # (TB, 1)
    # predict() scores for labels [-1, +1] (sorted ascending, as torch.sort).
    score_pos = 0.5 * (mv_sum + s_mv)                             # (TB, 1)
    score_neg = mv_sum - score_pos                                # (TB, 1)

    # Pack everything into one lane-dense 128-wide slab (unmasked vst).
    lane = jax.lax.broadcasted_iota(jnp.int32, stats_ref.shape, 1)
    stats_ref[...] = (jnp.where(lane == 0, corr, 0.0)
                      + jnp.where(lane == 1, wrong, 0.0)
                      + jnp.where(lane == 2, score_neg, 0.0)
                      + jnp.where(lane == 3, score_pos, 0.0))


def fused_mv_call(x_flat, Wv, bv, y, post, mv_post):
    """One pallas_call producing voter signs and packed stats."""
    B, D = x_flat.shape
    V = Wv.shape[1]
    Vp = _round_up(V, 128)            # lane-dense voter axis, full MXU columns
    Bp = _round_up(B, 8)              # sublane-aligned batch

    # bf16 MXU operands; weights/bias/posteriors zero-padded on the voter axis.
    xb = x_flat.astype(jnp.bfloat16)
    wb = jnp.zeros((D, Vp), jnp.bfloat16).at[:, :V].set(Wv.astype(jnp.bfloat16))
    params = jnp.zeros((8, Vp), jnp.float32)
    params = params.at[0, :V].set(bv)
    params = params.at[1, :V].set(post)
    params = params.at[2, :V].set(mv_post)

    yp = y
    if Bp != B:
        xb = jnp.zeros((Bp, D), jnp.bfloat16).at[:B].set(xb)
        yp = jnp.ones((Bp, 1), jnp.float32).at[:B].set(y)

    # Batch tiling: >=2 parallel grid steps at larger B (megacore on v7x);
    # at the demo shapes this is a single grid step with full-array blocks.
    # TODO(synk): at much larger D/V add K/N tiling + f32 VMEM accumulator
    # (pl.when init/finalize) to bound VMEM on v7x's 64 MiB; unnecessary here.
    TB = Bp if Bp <= 256 else 256
    grid = (Bp // TB,)

    out_p, stats = pl.pallas_call(
        _fused_mv_kernel,
        out_shape=(
            jax.ShapeDtypeStruct((Bp, Vp), jnp.float32),
            jax.ShapeDtypeStruct((Bp, 128), jnp.float32),
        ),
        grid=grid,
        in_specs=[
            pl.BlockSpec((TB, D), lambda i: (i, 0)),     # x (bf16)
            pl.BlockSpec((D, Vp), lambda i: (0, 0)),     # Wv (bf16), resident
            pl.BlockSpec((8, Vp), lambda i: (0, 0)),     # [bv; post; mv_post]
            pl.BlockSpec((TB, 1), lambda i: (i, 0)),     # y
        ],
        out_specs=(
            pl.BlockSpec((TB, Vp), lambda i: (i, 0)),    # voter signs
            pl.BlockSpec((TB, 128), lambda i: (i, 0)),   # packed stats slab
        ),
        compiler_params=pltpu.CompilerParams(
            dimension_semantics=("parallel",)),
    )(xb, wb, params, yp)
    return out_p, stats


# ----------------------------------------------------------------------------
# Forward pass equivalent of StoMajorityVoteDiff.forward (risk_name='exact').
# ----------------------------------------------------------------------------
def sto_majority_vote_forward(x, y, post_, prior, Wv, bv, dirichlet_key):
    B = x.shape[0]
    V = Wv.shape[1]
    x_flat = x.reshape(B, -1)
    post = jnp.exp(post_)

    # Dir(exp(post_)).rsample() for predict() — drawn on device, no host sync.
    mv_post = jax.random.dirichlet(dirichlet_key, post)

    # Fused kernel: mv.output(x), correct/wrong sums, predict() scores.
    out_p, stats = fused_mv_call(x_flat, Wv, bv, y, post, mv_post)
    out = out_p[:B, :V]                      # (B, V) voter predictions in {-1,+1}
    correct = stats[:B, 0:1]                 # (B, 1)
    wrong = stats[:B, 1:2]                   # (B, 1)
    score = stats[:B, 2:4]                   # (B, 2) columns = labels [-1, +1]

    # self.KL() — tiny (num_voters,) special-function op, plain JAX glue.
    kl = (gammaln(post.sum()) - gammaln(post).sum()
          - (gammaln(prior.sum()) - gammaln(prior).sum())
          + jnp.sum((post - prior) * (digamma(post) - digamma(post.sum()))))

    # exact margin: m = 1 - 2 * I_{0.5}(correct, wrong)
    # TODO(synk): BetaInc (regularized incomplete beta) has no Pallas/Mosaic
    # lowering; applied with jax.scipy.special.betainc on kernel-produced sums.
    eps = 1e-6                               # guard betainc against zero shape args
    margin = 1.0 - 2.0 * betainc(jnp.maximum(correct, eps),
                                 jnp.maximum(wrong, eps), 0.5)   # (B, 1)

    # self.predict(): voter outputs are signs and labels are +/-1, so the
    # sorted label set is statically {-1, +1} — no torch.unique host sync.
    # TODO(synk): data-dependent label sets (torch.unique growth across calls)
    # are not reproduced; the static binary {-1,+1} set is used instead.
    y_unique = jnp.array([-1.0, 1.0], jnp.float32)
    pred_idx = jnp.argmax(score, axis=1)                          # (B,)
    pred = y_unique[pred_idx][:, None]                            # (B, 1)

    # TODO(synk): risk_name='MC' (__approximated_margin) path not implemented;
    # the default 'exact' path is implemented above.
    return out, kl, margin, score, pred


if __name__ == "__main__":
    key = jax.random.PRNGKey(0)
    kx, ky, kw, kb, kd = jax.random.split(key, 5)

    # small shapes implied by the forward: batch of NCHW images, V voters
    B, C_in, H, W_sp = 8, 4, 16, 16
    V = 16                               # num_voters
    D = C_in * H * W_sp
    prior_val, mc_draws, sigmoid_c = 1.0, 10, 100   # mc_draws/sigmoid_c unused ('exact')

    x = jax.random.normal(kx, (B, C_in, H, W_sp), jnp.float32)
    y = jnp.where(jax.random.bernoulli(ky, 0.5, (B, 1)), 1.0, -1.0).astype(jnp.float32)

    # deterministic synthetic voters (the `mv` object) and module parameters
    Wv = 0.05 * jax.random.normal(kw, (D, V), jnp.float32)
    bv = 0.05 * jax.random.normal(kb, (V,), jnp.float32)
    prior = jnp.ones((V,), jnp.float32) * prior_val
    post_ = jnp.log(prior)               # nn.Parameter init: log(prior)

    fwd = jax.jit(sto_majority_vote_forward)
    out, kl, margin, score, pred = fwd(x, y, post_, prior, Wv, bv, kd)
    jax.block_until_ready((out, kl, margin, score, pred))

    # sanity checks
    post = jnp.exp(post_)
    mv_post = jax.random.dirichlet(kd, post)
    _, stats = fused_mv_call(x.reshape(B, -1), Wv, bv, y, post, mv_post)
    corr, wrong = stats[:B, 0:1], stats[:B, 1:2]

    assert out.shape == (B, V) and margin.shape == (B, 1) and pred.shape == (B, 1)
    assert score.shape == (B, 2)
    assert bool(jnp.all(jnp.abs(out) == 1.0))
    assert jnp.allclose(corr + wrong, post.sum(), atol=1e-4)
    assert jnp.allclose(score.sum(axis=1), 1.0, atol=1e-4)
    assert bool(jnp.all(jnp.abs(margin) <= 1.0 + 1e-5))
    assert bool(jnp.all(jnp.abs(pred) == 1.0))

    print("KERNEL_OK")
</pallas_src>

<mosaic_0001>
module attributes {stable_mosaic.version = 11 : i64} {
  func.func @_fused_mv_kernel(%arg0: i32, %arg1: memref<8x1024xbf16, #tpu.memory_space<vmem>>, %arg2: memref<1024x128xbf16, #tpu.memory_space<vmem>>, %arg3: memref<8x128xf32, #tpu.memory_space<vmem>>, %arg4: memref<8x1xf32, #tpu.memory_space<vmem>>, %arg5: memref<8x128xf32, #tpu.memory_space<vmem>>, %arg6: memref<8x128xf32, #tpu.memory_space<vmem>>) attributes {dimension_semantics = [#tpu.dimension_semantics<parallel>], iteration_bounds = array<i64: 1>, scalar_prefetch = 0 : i64, scratch_operands = 0 : i64, tpu.core_type = #tpu.core_type<tc>, window_params = [{transform_indices = @transform_0, window_bounds = array<i64: 8, 1024>}, {pipeline_mode = #tpu.pipeline_mode<synchronous>, transform_indices = @transform_1, window_bounds = array<i64: 1024, 128>}, {pipeline_mode = #tpu.pipeline_mode<synchronous>, transform_indices = @transform_2, window_bounds = array<i64: 8, 128>}, {transform_indices = @transform_3, window_bounds = array<i64: 8, 1>}, {transform_indices = @transform_4, window_bounds = array<i64: 8, 128>}, {transform_indices = @transform_5, window_bounds = array<i64: 8, 128>}]} {
    %c0 = arith.constant 0 : index
    %c0_0 = arith.constant 0 : index
    %0 = vector.load %arg1[%c0, %c0_0] : memref<8x1024xbf16, #tpu.memory_space<vmem>>, vector<8x1024xbf16>
    %c0_1 = arith.constant 0 : index
    %c0_2 = arith.constant 0 : index
    %1 = vector.load %arg2[%c0_1, %c0_2] : memref<1024x128xbf16, #tpu.memory_space<vmem>>, vector<1024x128xbf16>
    %cst = arith.constant dense<0.000000e+00> : vector<8x128xf32>
    %2 = tpu.matmul %0, %1, %cst {dimension_numbers = #tpu.dot_dimension_numbers<[1], [0], [0], [1], [0, 0, 1, 1], [], []>} : vector<8x1024xbf16>, vector<1024x128xbf16>, vector<8x128xf32> -> vector<8x128xf32>
    %c0_3 = arith.constant 0 : index
    %c0_4 = arith.constant 0 : index
    %3 = vector.load %arg3[%c0_3, %c0_4] : memref<8x128xf32, #tpu.memory_space<vmem>>, vector<8x128xf32>
    %4 = vector.extract_strided_slice %3 {offsets = [0, 0], sizes = [1, 128], strides = [1, 1]} : vector<8x128xf32> to vector<1x128xf32>
    %5 = vector.extract_strided_slice %3 {offsets = [1, 0], sizes = [1, 128], strides = [1, 1]} : vector<8x128xf32> to vector<1x128xf32>
    %6 = vector.extract_strided_slice %3 {offsets = [2, 0], sizes = [1, 128], strides = [1, 1]} : vector<8x128xf32> to vector<1x128xf32>
    %7 = vector.broadcast %4 : vector<1x128xf32> to vector<8x128xf32>
    %8 = arith.addf %2, %7 : vector<8x128xf32>
    %cst_5 = arith.constant 0.000000e+00 : f32
    %9 = vector.broadcast %cst_5 : f32 to vector<8x128xf32>
    %10 = arith.cmpf oge, %8, %9 : vector<8x128xf32>
    %cst_6 = arith.constant 1.000000e+00 : f32
    %cst_7 = arith.constant -1.000000e+00 : f32
    %11 = vector.broadcast %cst_6 : f32 to vector<8x128xf32>
    %12 = vector.broadcast %cst_7 : f32 to vector<8x128xf32>
    %13 = arith.select %10, %11, %12 : vector<8x128xi1>, vector<8x128xf32>
    %c0_8 = arith.constant 0 : index
    %c0_9 = arith.constant 0 : index
    %14 = vector.load %arg5[%c0_8, %c0_9] : memref<8x128xf32, #tpu.memory_space<vmem>>, vector<8x128xf32>
    tpu.vector_store %arg5[%c0_8, %c0_9], %13 {strides = array<i32>} : memref<8x128xf32, #tpu.memory_space<vmem>>, vector<8x128xf32>,
    %c0_10 = arith.constant 0 : index
    %c0_11 = arith.constant 0 : index
    %15 = vector.load %arg4[%c0_10, %c0_11] : memref<8x1xf32, #tpu.memory_space<vmem>>, vector<8x1xf32>
    %cst_12 = arith.constant dense<0.000000e+00> : vector<1xf32>
    %16 = vector.multi_reduction <add>, %5, %cst_12 [1] : vector<1x128xf32> to vector<1xf32>
    %17 = vector.shape_cast %16 : vector<1xf32> to vector<1x1xf32>
    %cst_13 = arith.constant dense<0.000000e+00> : vector<1xf32>
    %18 = vector.multi_reduction <add>, %6, %cst_13 [1] : vector<1x128xf32> to vector<1xf32>
    %19 = vector.shape_cast %18 : vector<1xf32> to vector<1x1xf32>
    %20 = vector.broadcast %5 : vector<1x128xf32> to vector<8x128xf32>
    %21 = arith.mulf %13, %20 : vector<8x128xf32>
    %cst_14 = arith.constant dense<0.000000e+00> : vector<8xf32>
    %22 = vector.multi_reduction <add>, %21, %cst_14 [1] : vector<8x128xf32> to vector<8xf32>
    %23 = vector.shape_cast %22 : vector<8xf32> to vector<8x1xf32>
    %24 = vector.broadcast %6 : vector<1x128xf32> to vector<8x128xf32>
    %25 = arith.mulf %13, %24 : vector<8x128xf32>
    %cst_15 = arith.constant dense<0.000000e+00> : vector<8xf32>
    %26 = vector.multi_reduction <add>, %25, %cst_15 [1] : vector<8x128xf32> to vector<8xf32>
    %27 = vector.shape_cast %26 : vector<8xf32> to vector<8x1xf32>
    %28 = arith.mulf %15, %23 : vector<8x1xf32>
    %29 = vector.broadcast %17 : vector<1x1xf32> to vector<8x1xf32>
    %30 = arith.addf %29, %28 : vector<8x1xf32>
    %cst_16 = arith.constant 5.000000e-01 : f32
    %31 = vector.broadcast %cst_16 : f32 to vector<8x1xf32>
    %32 = arith.mulf %31, %30 : vector<8x1xf32>
    %33 = vector.broadcast %17 : vector<1x1xf32> to vector<8x1xf32>
    %34 = arith.subf %33, %32 : vector<8x1xf32>
    %35 = vector.broadcast %19 : vector<1x1xf32> to vector<8x1xf32>
    %36 = arith.addf %35, %27 : vector<8x1xf32>
    %cst_17 = arith.constant 5.000000e-01 : f32
    %37 = vector.broadcast %cst_17 : f32 to vector<8x1xf32>
    %38 = arith.mulf %37, %36 : vector<8x1xf32>
    %39 = vector.broadcast %19 : vector<1x1xf32> to vector<8x1xf32>
    %40 = arith.subf %39, %38 : vector<8x1xf32>
    %41 = tpu.iota {dimensions = array<i32: 1>} : vector<8x128xi32>
    %c0_i32 = arith.constant 0 : i32
    %42 = vector.broadcast %c0_i32 : i32 to vector<8x128xi32>
    %43 = arith.cmpi eq, %41, %42 : vector<8x128xi32>
    %cst_18 = arith.constant 0.000000e+00 : f32
    %44 = vector.shape_cast %32 : vector<8x1xf32> to vector<8x1xf32>
    %45 = vector.broadcast %44 : vector<8x1xf32> to vector<8x128xf32>
    %46 = vector.broadcast %cst_18 : f32 to vector<8x128xf32>
    %47 = arith.select %43, %45, %46 : vector<8x128xi1>, vector<8x128xf32>
    %c1_i32 = arith.constant 1 : i32
    %48 = vector.broadcast %c1_i32 : i32 to vector<8x128xi32>
    %49 = arith.cmpi eq, %41, %48 : vector<8x128xi32>
    %cst_19 = arith.constant 0.000000e+00 : f32
    %50 = vector.shape_cast %34 : vector<8x1xf32> to vector<8x1xf32>
    %51 = vector.broadcast %50 : vector<8x1xf32> to vector<8x128xf32>
    %52 = vector.broadcast %cst_19 : f32 to vector<8x128xf32>
    %53 = arith.select %49, %51, %52 : vector<8x128xi1>, vector<8x128xf32>
    %54 = arith.addf %47, %53 : vector<8x128xf32>
    %c2_i32 = arith.constant 2 : i32
    %55 = vector.broadcast %c2_i32 : i32 to vector<8x128xi32>
    %56 = arith.cmpi eq, %41, %55 : vector<8x128xi32>
    %cst_20 = arith.constant 0.000000e+00 : f32
    %57 = vector.shape_cast %40 : vector<8x1xf32> to vector<8x1xf32>
    %58 = vector.broadcast %57 : vector<8x1xf32> to vector<8x128xf32>
    %59 = vector.broadcast %cst_20 : f32 to vector<8x128xf32>
    %60 = arith.select %56, %58, %59 : vector<8x128xi1>, vector<8x128xf32>
    %61 = arith.addf %54, %60 : vector<8x128xf32>
    %c3_i32 = arith.constant 3 : i32
    %62 = vector.broadcast %c3_i32 : i32 to vector<8x128xi32>
    %63 = arith.cmpi eq, %41, %62 : vector<8x128xi32>
    %cst_21 = arith.constant 0.000000e+00 : f32
    %64 = vector.shape_cast %38 : vector<8x1xf32> to vector<8x1xf32>
    %65 = vector.broadcast %64 : vector<8x1xf32> to vector<8x128xf32>
    %66 = vector.broadcast %cst_21 : f32 to vector<8x128xf32>
    %67 = arith.select %63, %65, %66 : vector<8x128xi1>, vector<8x128xf32>
    %68 = arith.addf %61, %67 : vector<8x128xf32>
    %c0_22 = arith.constant 0 : index
    %c0_23 = arith.constant 0 : index
    %69 = vector.load %arg6[%c0_22, %c0_23] : memref<8x128xf32, #tpu.memory_space<vmem>>, vector<8x128xf32>
    tpu.vector_store %arg6[%c0_22, %c0_23], %68 {strides = array<i32>} : memref<8x128xf32, #tpu.memory_space<vmem>>, vector<8x128xf32>,
    return
  }
  func.func @transform_0(%arg0: i32) -> (i32, i32) {
    %c0_i32 = arith.constant 0 : i32
    %c0_i32_0 = arith.constant 0 : i32
    return %arg0, %c0_i32 : i32, i32
  }
  func.func @transform_1(%arg0: i32) -> (i32, i32) {
    %c0_i32 = arith.constant 0 : i32
    %c0_i32_0 = arith.constant 0 : i32
    %c0_i32_1 = arith.constant 0 : i32
    return %c0_i32, %c0_i32_0 : i32, i32
  }
  func.func @transform_2(%arg0: i32) -> (i32, i32) {
    %c0_i32 = arith.constant 0 : i32
    %c0_i32_0 = arith.constant 0 : i32
    %c0_i32_1 = arith.constant 0 : i32
    return %c0_i32, %c0_i32_0 : i32, i32
  }
  func.func @transform_3(%arg0: i32) -> (i32, i32) {
    %c0_i32 = arith.constant 0 : i32
    %c0_i32_0 = arith.constant 0 : i32
    return %arg0, %c0_i32 : i32, i32
  }
  func.func @transform_4(%arg0: i32) -> (i32, i32) {
    %c0_i32 = arith.constant 0 : i32
    %c0_i32_0 = arith.constant 0 : i32
    return %arg0, %c0_i32 : i32, i32
  }
  func.func @transform_5(%arg0: i32) -> (i32, i32) {
    %c0_i32 = arith.constant 0 : i32
    %c0_i32_0 = arith.constant 0 : i32
    return %arg0, %c0_i32 : i32, i32
  }
}

</mosaic_0001>

<bundles_post_ra>
// kernel: sto_majority_vote_forward.1
= control target key start
LH: loop header
LB: loop body
LE: loop exit
PB: predicated region body
PF: predicated region fallthrough
CT: control target
= control target key end

     0   :  { %s1343_s0 = inlined_call_operand.vmem [shape: bf16[8,1024], index: 0, kind: input, shape index: {}]   ;;  %s1344_s1 = inlined_call_operand.vmem [shape: bf16[1024,128], index: 1, kind: input, shape index: {}]   ;;  %s1345_s2 = inlined_call_operand.vmem [shape: f32[8,128], index: 2, kind: input, shape index: {}]   ;;  %s1346_s3 = inlined_call_operand.vmem [shape: f32[8,1], index: 3, kind: input, shape index: {}]   ;;  %s1347_s4 = inlined_call_operand.hbm [shape: f32[8,128], index: 4, kind: output, shape index: {0}]   ;;  %s1348_s5 = inlined_call_operand.vmem [shape: f32[8,128], index: 5, kind: output, shape index: {1}]  }
   0x1   :  { %v1006_v0 = vld [vmem:[%s1344_s1 + $0x38] sm:$0xff]  ;;  %v1005_v4 = vld [vmem:[%s1344_s1 + $0x30] sm:$0xff]  ;;  %v1004_v8 = vld [vmem:[%s1344_s1 + $0x28] sm:$0xff] }
   0x2   :  { %v1014_v1 = vld [vmem:[%s1344_s1 + $0x78] sm:$0xff]  ;;  %566 = vmatpush.bf16.msra.mxu0 %v1006_v0  ;;  %v1013_v5 = vld [vmem:[%s1344_s1 + $0x70] sm:$0xff]  ;;  %v1012_v9 = vld [vmem:[%s1344_s1 + $0x68] sm:$0xff] }
   0x3   :  { %v1022_v2 = vld [vmem:[%s1344_s1 + $0xb8] sm:$0xff]  ;;  %579 = vmatpush.bf16.msra.mxu1 %v1014_v1  ;;  %v1021_v6 = vld [vmem:[%s1344_s1 + $0xb0] sm:$0xff]  ;;  %v1020_v10 = vld [vmem:[%s1344_s1 + $0xa8] sm:$0xff] }
   0x4   :  { %v1030_v3 = vld [vmem:[%s1344_s1 + $0xf8] sm:$0xff]  ;;  %592 = vmatpush.bf16.msra.mxu2 %v1022_v2  ;;  %v1029_v7 = vld [vmem:[%s1344_s1 + $0xf0] sm:$0xff]  ;;  %v1028_v11 = vld [vmem:[%s1344_s1 + $0xe8] sm:$0xff] }
   0x5   :  { %605 = vmatpush.bf16.msra.mxu3 %v1030_v3  ;;  %v1003_v12 = vld [vmem:[%s1344_s1 + $0x20] sm:$0xff]  ;;  %v1002_v16 = vld [vmem:[%s1344_s1 + $0x18] sm:$0xff]  ;;  %v1001_v20 = vld [vmem:[%s1344_s1 + $0x10] sm:$0xff] }
   0x6   :  { %567 = vmatpush.bf16.msra.mxu0 %v1005_v4  ;;  %v1011_v13 = vld [vmem:[%s1344_s1 + $0x60] sm:$0xff]  ;;  %v1010_v17 = vld [vmem:[%s1344_s1 + $0x58] sm:$0xff]  ;;  %v1009_v21 = vld [vmem:[%s1344_s1 + $0x50] sm:$0xff] }
   0x7   :  { %580 = vmatpush.bf16.msra.mxu1 %v1013_v5  ;;  %v1019_v14 = vld [vmem:[%s1344_s1 + $0xa0] sm:$0xff]  ;;  %v1018_v18 = vld [vmem:[%s1344_s1 + $0x98] sm:$0xff] }
   0x8   :  { %593 = vmatpush.bf16.msra.mxu2 %v1021_v6  ;;  %v1027_v15 = vld [vmem:[%s1344_s1 + $0xe0] sm:$0xff]  ;;  %v1026_v19 = vld [vmem:[%s1344_s1 + $0xd8] sm:$0xff] }
   0x9   :  { %606 = vmatpush.bf16.msra.mxu3 %v1029_v7 }
   0xa   :  { %568 = vmatpush.bf16.msra.mxu0 %v1004_v8 }
   0xb   :  { %581 = vmatpush.bf16.msra.mxu1 %v1012_v9 }
   0xc   :  { %594 = vmatpush.bf16.msra.mxu2 %v1020_v10 }
   0xd   :  { %607 = vmatpush.bf16.msra.mxu3 %v1028_v11 }
   0xe   :  { %569 = vmatpush.bf16.msra.mxu0 %v1003_v12 }
   0xf   :  { %582 = vmatpush.bf16.msra.mxu1 %v1011_v13 }
  0x10   :  { %595 = vmatpush.bf16.msra.mxu2 %v1019_v14 }
  0x11   :  { %608 = vmatpush.bf16.msra.mxu3 %v1027_v15 }
  0x12   :  { %570 = vmatpush.bf16.msra.mxu0 %v1002_v16 }
  0x13   :  { %583 = vmatpush.bf16.msra.mxu1 %v1010_v17 }
  0x14   :  { %11 = vsyncpa [#allocation3], 0  ;;  %596 = vmatpush.bf16.msra.mxu2 %v1018_v18  ;;  %v1017_v22 = vld [vmem:[%s1344_s1 + $0x90] sm:$0xff]  ;;  %v1000_v24 = vld [vmem:[%s1344_s1 + $0x8] sm:$0xff]  ;;  %vm678_vm0 = vcmask 1042434   ;;  %vm674_vm1 = vcmask 1041409  }
  0x15   :  { %609 = vmatpush.bf16.msra.mxu3 %v1026_v19  ;;  %v1025_v23 = vld [vmem:[%s1344_s1 + $0xd0] sm:$0xff]  ;;  %v1008_v25 = vld [vmem:[%s1344_s1 + $0x48] sm:$0xff]  ;;  %v20_v29 = vld [vmem:[%s1343_s0] sm:$0xff]  ;;  %s730_s7 = sshll.u32 %s1347_s4, 4  ;;  %s731_s7 = int_to_ptr.hbm [resolvable:$true] %s730_s7 }
  0x16   :  { %571 = vmatpush.bf16.msra.mxu0 %v1001_v20  ;;  %v1016_v26 = vld [vmem:[%s1344_s1 + $0x88] sm:$0xff]  ;;  %v999_v30 = vld [vmem:[%s1344_s1] sm:$0xff]  ;;  %v158_v33 = vunpack.c.l.b16 %v20_v29  ;;  %v159_v37 = vunpack.c.h.b16 %v20_v29  ;;  %v1038_v38 = vld [vmem:[%s1344_s1 + $0x138] sm:$0xff] }
  0x17   :  { %584 = vmatpush.bf16.msra.mxu1 %v1009_v21  ;;  %v1024_v27 = vld [vmem:[%s1344_s1 + $0xc8] sm:$0xff]  ;;  %v1007_v31 = vld [vmem:[%s1344_s1 + $0x40] sm:$0xff]  ;;  %v1046_v39 = vld [vmem:[%s1344_s1 + $0x178] sm:$0xff] }
  0x18   :  { %597 = vmatpush.bf16.msra.mxu2 %v1017_v22  ;;  %v21_v28 = vld [vmem:[%s1343_s0 + $0x8] sm:$0xff]  ;;  %v1015_v34 = vld [vmem:[%s1344_s1 + $0x80] sm:$0xff]  ;;  %v1054_v40 = vld [vmem:[%s1344_s1 + $0x1b8] sm:$0xff]  ;;  %v166_v43 = vpack.c.b16 %v158_v33, %v158_v33  ;;  %v167_v45 = vpack.c.b16 %v159_v37, %v159_v37 }
  0x19   :  { %610 = vmatpush.bf16.msra.mxu3 %v1025_v23  ;;  %v160_v32 = vunpack.c.l.b16 %v21_v28  ;;  %v1023_v35 = vld [vmem:[%s1344_s1 + $0xc0] sm:$0xff]  ;;  %v161_v36 = vunpack.c.h.b16 %v21_v28  ;;  %v1062_v41 = vld [vmem:[%s1344_s1 + $0x1f8] sm:$0xff]  ;;  %v1037_v46 = vld [vmem:[%s1344_s1 + $0x130] sm:$0xff] }
  0x1a   :  { %572 = vmatpush.bf16.msra.mxu0 %v1000_v24  ;;  %v1045_v47 = vld [vmem:[%s1344_s1 + $0x170] sm:$0xff]  ;;  %v1036_v50 = vld [vmem:[%s1344_s1 + $0x128] sm:$0xff]  ;;  %v1035_v54 = vld [vmem:[%s1344_s1 + $0x120] sm:$0xff] }
  0x1b   :  { %585 = vmatpush.bf16.msra.mxu1 %v1008_v25  ;;  %v168_v42 = vpack.c.b16 %v160_v32, %v160_v32  ;;  %v169_v44 = vpack.c.b16 %v161_v36, %v161_v36  ;;  %v1053_v48 = vld [vmem:[%s1344_s1 + $0x1b0] sm:$0xff]  ;;  %v1044_v51 = vld [vmem:[%s1344_s1 + $0x168] sm:$0xff]  ;;  %v1043_v55 = vld [vmem:[%s1344_s1 + $0x160] sm:$0xff] }
  0x1c   :  { %598 = vmatpush.bf16.msra.mxu2 %v1016_v26  ;;  %v1061_v49 = vld [vmem:[%s1344_s1 + $0x1f0] sm:$0xff]  ;;  %v1052_v52 = vld [vmem:[%s1344_s1 + $0x1a8] sm:$0xff]  ;;  %v1051_v56 = vld [vmem:[%s1344_s1 + $0x1a0] sm:$0xff] }
  0x1d   :  { %611 = vmatpush.bf16.msra.mxu3 %v1024_v27  ;;  %v1060_v53 = vld [vmem:[%s1344_s1 + $0x1e8] sm:$0xff]  ;;  %v1059_v57 = vld [vmem:[%s1344_s1 + $0x1e0] sm:$0xff]  ;;  %v1034_v58 = vld [vmem:[%s1344_s1 + $0x118] sm:$0xff] }
  0x1e   :  { %573 = vmatpush.bf16.msra.mxu0 %v999_v30  ;;  %v1042_v59 = vld [vmem:[%s1344_s1 + $0x158] sm:$0xff]  ;;  %v1033_v62 = vld [vmem:[%s1344_s1 + $0x110] sm:$0xff]  ;;  %v1032_v2 = vld [vmem:[%s1344_s1 + $0x108] sm:$0xff] }
  0x1f   :  { %586 = vmatpush.bf16.msra.mxu1 %v1007_v31  ;;  %v1050_v60 = vld [vmem:[%s1344_s1 + $0x198] sm:$0xff]  ;;  %v1041_v63 = vld [vmem:[%s1344_s1 + $0x150] sm:$0xff]  ;;  %v1040_v3 = vld [vmem:[%s1344_s1 + $0x148] sm:$0xff] }
  0x20   :  { %599 = vmatpush.bf16.msra.mxu2 %v1015_v34  ;;  %v1058_v61 = vld [vmem:[%s1344_s1 + $0x1d8] sm:$0xff]  ;;  %v1049_v0 = vld [vmem:[%s1344_s1 + $0x190] sm:$0xff]  ;;  %v1048_v5 = vld [vmem:[%s1344_s1 + $0x188] sm:$0xff] }
  0x21   :  { %612 = vmatpush.bf16.msra.mxu3 %v1023_v35  ;;  %574 = vmatmul.bf16.vlgmr.msra.gmra.mxu0 %v166_v43  ;;  %v1057_v1 = vld [vmem:[%s1344_s1 + $0x1d0] sm:$0xff]  ;;  %v1056_v6 = vld [vmem:[%s1344_s1 + $0x1c8] sm:$0xff]  ;;  %v23_v7 = vld [vmem:[%s1343_s0 + $0x18] sm:$0xff] }
  0x22   :  { %618 = vmatpush.bf16.msrb.mxu0 %v1038_v38  ;;  %587 = vmatmul.bf16.vlgmr.msra.gmra.mxu1 %v167_v45  ;;  %v22_v4 = vld [vmem:[%s1343_s0 + $0x10] sm:$0xff]  ;;  %v1031_v10 = vld [vmem:[%s1344_s1 + $0x100] sm:$0xff]  ;;  %v164_v12 = vunpack.c.l.b16 %v23_v7  ;;  %v165_v13 = vunpack.c.h.b16 %v23_v7 }
  0x23   :  { %631 = vmatpush.bf16.msrb.mxu1 %v1046_v39  ;;  %600 = vmatmul.bf16.vlgmr.msra.gmra.mxu2 %v168_v42  ;;  %v162_v8 = vunpack.c.l.b16 %v22_v4  ;;  %v163_v9 = vunpack.c.h.b16 %v22_v4  ;;  %v1039_v11 = vld [vmem:[%s1344_s1 + $0x140] sm:$0xff] }
  0x24   :  { %644 = vmatpush.bf16.msrb.mxu2 %v1054_v40  ;;  %613 = vmatmul.bf16.vlgmr.msra.gmra.mxu3 %v169_v44  ;;  %v1047_v14 = vld [vmem:[%s1344_s1 + $0x180] sm:$0xff]  ;;  %v172_v18 = vpack.c.b16 %v164_v12, %v164_v12  ;;  %v173_v19 = vpack.c.b16 %v165_v13, %v165_v13 }
  0x25   :  { %657 = vmatpush.bf16.msrb.mxu3 %v1062_v41  ;;  %v1055_v15 = vld [vmem:[%s1344_s1 + $0x1c0] sm:$0xff]  ;;  %v170_v16 = vpack.c.b16 %v162_v8, %v162_v8  ;;  %v171_v17 = vpack.c.b16 %v163_v9, %v163_v9  ;;  %s1096_s1 = smov [#allocation2]  }
  0x26   :  { %619 = vmatpush.bf16.msrb.mxu0 %v1037_v46  ;;  %v152_v22 = vld [vmem:[%s1345_s2] sm:$0xff]  ;;  %s728_s2 = sshll.u32 %s1096_s1, 4  ;;  %s729_s2 = int_to_ptr.vmem [resolvable:$true] %s728_s2 }
  0x27   :  { %632 = vmatpush.bf16.msrb.mxu1 %v1045_v47  ;;  %v679_v23 = vsel %vm678_vm0, %v152_v22, 0.0  ;;  %v675_v24 = vsel %vm674_vm1, %v152_v22, 0.0  ;;  %v153_v29 = vperm.slane %v152_v22, 0  ;;  %v686_v46 = vperm.slane %v152_v22, 2 }
  0x28   :  { %645 = vmatpush.bf16.msrb.mxu2 %v1053_v48  ;;  %680 = vadd.xlane.f32.xlu1 %v679_v23  ;;  %v682_v47 = vperm.slane %v152_v22, 1  ;;  %v1094_v48 = vmov -1.0  }
  0x29   :  { %658 = vmatpush.bf16.msrb.mxu3 %v1061_v49  ;;  %676 = vadd.xlane.f32.xlu0 %v675_v24 }
  0x2a   :  { %620 = vmatpush.bf16.msrb.mxu0 %v1036_v50 }
  0x2b   :  { %633 = vmatpush.bf16.msrb.mxu1 %v1044_v51 }
  0x2c   :  { %646 = vmatpush.bf16.msrb.mxu2 %v1052_v52 }
  0x2d   :  { %659 = vmatpush.bf16.msrb.mxu3 %v1060_v53 }
  0x2e   :  { %621 = vmatpush.bf16.msrb.mxu0 %v1035_v54  ;;  %v1095_v54 = vmov 0  }
  0x2f   :  { %634 = vmatpush.bf16.msrb.mxu1 %v1043_v55  ;;  %1066 = vset.pattern.permute.xlu2 %v1095_v54 }
  0x30   :  { %647 = vmatpush.bf16.msrb.mxu2 %v1051_v56  ;;  %1067 = vset.pattern.permute.xlu0 %v1095_v54  ;;  %v673_v56 = vld [vmem:[%s1346_s3] sm:$0xff] }
  0x31   :  { %660 = vmatpush.bf16.msrb.mxu3 %v1059_v57 }
  0x32   :  { %622 = vmatpush.bf16.msrb.mxu0 %v1034_v58 }
  0x33   :  { %635 = vmatpush.bf16.msrb.mxu1 %v1042_v59 }
  0x34   :  { %648 = vmatpush.bf16.msrb.mxu2 %v1050_v60 }
  0x35   :  { %661 = vmatpush.bf16.msrb.mxu3 %v1058_v61 }
  0x36   :  { %623 = vmatpush.bf16.msrb.mxu0 %v1033_v62 }
  0x37   :  { %636 = vmatpush.bf16.msrb.mxu1 %v1041_v63 }
  0x38   :  { %649 = vmatpush.bf16.msrb.mxu2 %v1049_v0 }
  0x39   :  { %662 = vmatpush.bf16.msrb.mxu3 %v1057_v1 }
  0x3a   :  { %624 = vmatpush.bf16.msrb.mxu0 %v1032_v2 }
  0x3b   :  { %637 = vmatpush.bf16.msrb.mxu1 %v1040_v3  ;;  %v699_v3 = vlaneseq }
  0x3c   :  { %650 = vmatpush.bf16.msrb.mxu2 %v1048_v5 }
  0x3d   :  { %663 = vmatpush.bf16.msrb.mxu3 %v1056_v6  ;;  %v700_v6 = vand.u32 127, %v699_v3 }
  0x3e   :  { %625 = vmatpush.bf16.msrb.mxu0 %v1031_v10 }
  0x3f   :  { %638 = vmatpush.bf16.msrb.mxu1 %v1039_v11  ;;  %vm701_vm3 = vcmp.eq.s32.totalorder %v700_v6, 0  ;;  %vm708_vm4 = vcmp.eq.s32.totalorder %v700_v6, 1  ;;  %vm716_vm5 = vcmp.eq.s32.totalorder %v700_v6, 2  ;;  %vm719_vm6 = vcmp.eq.s32.totalorder %v700_v6, 3 }
  0x40   :  { %651 = vmatpush.bf16.msrb.mxu2 %v1047_v14 }
  0x41   :  { %664 = vmatpush.bf16.msrb.mxu3 %v1055_v15  ;;  %626 = vmatmul.bf16.vlgmr.msrb.gmra.mxu0 %v170_v16 }
  0x42   :  { %639 = vmatmul.bf16.vlgmr.msrb.gmra.mxu1 %v171_v17 }
  0x43   :  { %652 = vmatmul.bf16.vlgmr.msrb.gmra.mxu2 %v172_v18 }
  0x44   :  { %665 = vmatmul.bf16.vlgmr.msrb.gmra.mxu3 %v173_v19 }
  0x9b   :  { %v681_v63 = vpop.xlane.xlu1 %680 }
  0x9c   :  { %v677_v55 = vpop.xlane.xlu0 %676  ;;  %v695_v0 = vperm.slane %v681_v63, 2 }
  0x9d   :  { %v691_v58 = vperm.slane %v677_v55, 1 }
  0x9e   :  { %v575_v20 = vpop.f32.mrf.mxu0 }
  0x9f   :  { %v588_v21 = vpop.f32.mrf.mxu1  ;;  %v576_v32 = vadd.f32 %v575_v20, %v153_v29 }
  0xa1   :  { %v589_v33 = vadd.f32 %v588_v21, %v576_v32 }
  0xa6   :  { %v601_v25 = vpop.f32.mrf.mxu2  ;;  %v577_v27 = vpop.f32.mrf.mxu0 }
  0xa7   :  { %v614_v26 = vpop.f32.mrf.mxu3  ;;  %v590_v28 = vpop.f32.mrf.mxu1  ;;  %v602_v34 = vadd.f32 %v601_v25, %v589_v33 }
  0xa9   :  { %v615_v35 = vadd.f32 %v614_v26, %v602_v34 }
  0xae   :  { %v603_v30 = vpop.f32.mrf.mxu2 }
  0xaf   :  { %v616_v31 = vpop.f32.mrf.mxu3 }
  0xbe   :  { %v627_v36 = vpop.f32.mrf.mxu0 }
  0xbf   :  { %v640_v37 = vpop.f32.mrf.mxu1  ;;  %v628_v38 = vadd.f32 %v627_v36, %v615_v35 }
  0xc1   :  { %v641_v39 = vadd.f32 %v640_v37, %v628_v38 }
  0xc6   :  { %v653_v40 = vpop.f32.mrf.mxu2  ;;  %v629_v43 = vpop.f32.mrf.mxu0 }
  0xc7   :  { %v666_v41 = vpop.f32.mrf.mxu3  ;;  %v654_v42 = vadd.f32 %v653_v40, %v641_v39  ;;  %v642_v44 = vpop.f32.mrf.mxu1 }
  0xc9   :  { %v667_v45 = vadd.f32 %v666_v41, %v654_v42 }
  0xcb   :  { %vm670_vm2 = vcmp.ge.f32.partialorder %v667_v45, 0.0 }
  0xcc   :  { %v671_v49 = vsel %vm670_vm2, 1.0, %v1094_v48 }
  0xcd   :  { %672 = vst [vmem:[#allocation2] sm:$0xff] %v671_v49  ;;  %v687_v50 = vmul.f32 %v686_v46, %v671_v49  ;;  %v683_v51 = vmul.f32 %v682_v47, %v671_v49 }
  0xce   :  { %v655_v52 = vpop.f32.mrf.mxu2  ;;  %733 = dma.vmem_to_hbm [thread:$0]  %s729_s2, 128, %s731_s7, [#allocation3]  }
  0xcf   :  { %v668_v53 = vpop.f32.mrf.mxu3  ;;  %688 = vadd.xlane.f32.xlu1 %v687_v50  ;;  %684 = vadd.xlane.f32.xlu0 %v683_v51 }
 0x142   :  { %v685_v57 = vpop.xlane.xlu0 %684  ;;  %v689_v1 = vpop.xlane.xlu1 %688 }
 0x143   :  { %v690_v59 = vmul.f32 %v685_v57, %v673_v56  ;;  %v696_v2 = vadd.f32 %v695_v0, %v689_v1 }
 0x145   :  { %v692_v60 = vadd.f32 %v691_v58, %v690_v59  ;;  %v697_v5 = vmul.f32 0.5, %v696_v2 }
 0x147   :  { %v693_v61 = vmul.f32 0.5, %v692_v60  ;;  %v698_v7 = vsub.f32 %v695_v0, %v697_v5  ;;  %v720_v14 = vsel %vm719_vm6, %v697_v5, 0.0 }
 0x149   :  { %704 = vperm.xlu2 %1066, %v693_v61   ;;  %v694_v62 = vsub.f32 %v691_v58, %v693_v61  ;;  %v717_v12 = vsel %vm716_vm5, %v698_v7, 0.0 }
 0x151   :  { %711 = vperm.xlu2 %1066, %v694_v62  }
 0x1a3   :  { %v705_v4 = vpop.permute.xlu2 %704 }
 0x1a4   :  { %v707_v9 = vsel %vm701_vm3, %v705_v4, 0.0 }
 0x1ab   :  { %v712_v8 = vpop.permute.xlu2 %711 }
 0x1ac   :  { %v714_v10 = vsel %vm708_vm4, %v712_v8, 0.0 }
 0x1ad   :  { %v715_v11 = vadd.f32 %v714_v10, %v707_v9 }
 0x1af   :  { %v718_v13 = vadd.f32 %v717_v12, %v715_v11 }
 0x1b1   :  { %v721_v15 = vadd.f32 %v720_v14, %v718_v13 }
 0x1b3   :  { %722 = vst [vmem:[%s1348_s5] sm:$0xff] %v721_v15 }
 0x1b4   :  { %1092 = dma.done.wait [#allocation3], 128  }
 0x1b5   :  { %1093 = vsyncadd [#allocation3], 4294967168 }
 0x1b6   :  { %742 = vsyncpa [#allocation3], 1 }

</bundles_post_ra>
